<compile_context>
chip_gen: v6e
topology: v6e:2x2x1
jax: 0.10.0
libtpu: 0.0.40
codegen_flags: <defaults>
</compile_context>

<pallas_src>
import jax
import jax.numpy as jnp
from jax.experimental import pallas as pl
from jax.experimental.pallas import tpu as pltpu


def _detection_kernel(pred_ref, off_ref, scale_ref, out_ref):
    """Decode one (M_TILE, A, L_TILE) tile of YOLO predictions.

    pred_ref / out_ref : (MT, A, LT)  MT = rows of (batch, anchor), LT grid cells
    off_ref            : (1,  A, LT)  row0 = grid_x, row1 = grid_y, rest 0
    scale_ref          : (MT, A, 1)   rows 0,1 = stride, rows 2,3 = anchor w/h (px), rest 1
    """
    p = pred_ref[...].astype(jnp.float32)            # (MT, A, LT)
    s = jax.nn.sigmoid(p)
    # rows 0,1: (sigmoid + grid) * stride ; rows 4+: sigmoid * 1 ; rows 2,3 fixed below
    out_ref[...] = (s + off_ref[...]) * scale_ref[...]
    # rows 2,3: exp(t) * anchor  (stride already folded into the scale slab)
    out_ref[:, 2:4, :] = jnp.exp(p[:, 2:4, :]) * scale_ref[:, 2:4, :]


def _round_up(x, m):
    return (x + m - 1) // m * m


def _pick_tiles(M, A, L, itemsize=4):
    """Pick (m_tile, l_tile, vmem_limit_bytes), generation aware."""
    A_pad = max(8, _round_up(A, 8))
    try:
        cap = int(pltpu.get_tpu_info().vmem_capacity_bytes)
    except Exception:
        cap = 64 << 20                      # conservative fallback (v7x-sized)
    # Double-buffered block budget: ~half of physical VMEM, capped at 60 MiB
    # (-> ~32 MiB on v7x's 64 MiB, ~60 MiB on v5e/v6e's 128 MiB).
    budget = min(cap // 2, 60 << 20)
    max_lanes = 2048 if cap >= (96 << 20) else 1024

    l_tile = L if L <= 128 else min(max_lanes, _round_up(L, 128))

    def need(m, l):
        # pred + out double-buffered, plus offset and scale blocks (double-buffered)
        return (4 * m + 2) * A_pad * l * itemsize + 2 * m * A_pad * itemsize

    m_tile = M
    while m_tile > 1 and need(m_tile, l_tile) > budget:
        m_tile = pl.cdiv(m_tile, 2)
    while l_tile > 128 and need(m_tile, l_tile) > budget:
        l_tile = _round_up(l_tile // 2, 128)

    vmem_limit = int(min(max(need(m_tile, l_tile) + (4 << 20), 32 << 20),
                         cap - (8 << 20)))
    return m_tile, l_tile, vmem_limit


def detection_layer_forward(x, anchors, num_classes, img_dim):
    """JAX/Pallas equivalent of DetectionLayer.forward (inference branch)."""
    nB, C, nG, nG2 = x.shape
    assert nG == nG2
    nA = len(anchors)
    A = 5 + num_classes
    assert C == nA * A, "channel dim must be nA * (5 + num_classes)"
    stride = float(img_dim) / float(nG)
    M = nB * nA
    L = nG * nG

    # Contiguous (free) re-layout: row m = b*nA + a, lanes = flattened grid cells.
    pred = x.reshape(M, A, L)

    # Offset slab (1, A, L): row0 = grid_x, row1 = grid_y, rest 0.
    idx = jnp.arange(L, dtype=jnp.int32)
    gx = (idx % nG).astype(jnp.float32)
    gy = (idx // nG).astype(jnp.float32)
    offset = jnp.concatenate(
        [gx[None, :], gy[None, :], jnp.zeros((A - 2, L), jnp.float32)], axis=0
    )[None]                                                        # (1, A, L)

    # Scale slab (M, A, 1): rows 0,1 -> stride; rows 2,3 -> raw anchor w/h
    # (== (anchor/stride)*stride of the reference); rest -> 1.
    anc = jnp.asarray(anchors, jnp.float32)                        # (nA, 2)
    base = jnp.ones((nA, A), jnp.float32)
    base = base.at[:, 0].set(stride).at[:, 1].set(stride)
    base = base.at[:, 2].set(anc[:, 0]).at[:, 3].set(anc[:, 1])
    scale = jnp.tile(base, (nB, 1)).reshape(M, A, 1)               # row m = b*nA + a

    m_tile, l_tile, vmem_limit = _pick_tiles(M, A, L)
    grid = (pl.cdiv(M, m_tile), pl.cdiv(L, l_tile))

    out = pl.pallas_call(
        _detection_kernel,
        out_shape=jax.ShapeDtypeStruct((M, A, L), jnp.float32),
        grid_spec=pl.GridSpec(
            grid=grid,
            in_specs=[
                pl.BlockSpec((m_tile, A, l_tile), lambda m, l: (m, 0, l)),
                pl.BlockSpec((1, A, l_tile), lambda m, l: (0, 0, l)),
                pl.BlockSpec((m_tile, A, 1), lambda m, l: (m, 0, 0)),
            ],
            out_specs=pl.BlockSpec((m_tile, A, l_tile), lambda m, l: (m, 0, l)),
        ),
        compiler_params=pltpu.CompilerParams(
            dimension_semantics=("parallel", "parallel"),  # disjoint tiles -> megacore-shardable
            vmem_limit_bytes=vmem_limit,
        ),
    )(pred, offset, scale)

    # Back to the PyTorch output convention (nB, nA*nG*nG, 5+num_classes).
    # TODO(synk): drop this transpose if the consumer accepts the (M, A, L) layout.
    out = out.reshape(nB, nA, A, nG, nG)
    out = jnp.transpose(out, (0, 1, 3, 4, 2)).reshape(nB, nA * nG * nG, A)
    return out


def _reference(x, anchors, num_classes, img_dim):
    """Pure-JAX transcription of the PyTorch forward, for verification."""
    nB, C, nG, _ = x.shape
    nA = len(anchors)
    A = 5 + num_classes
    stride = img_dim / nG
    pred = x.reshape(nB, nA, A, nG, nG).transpose(0, 1, 3, 4, 2).astype(jnp.float32)
    sig = jax.nn.sigmoid(pred)
    g = jnp.arange(nG, dtype=jnp.float32)
    gx = jnp.broadcast_to(g[None, :], (nG, nG))
    gy = jnp.broadcast_to(g[:, None], (nG, nG))
    scaled = jnp.asarray(anchors, jnp.float32) / stride
    bx = sig[..., 0] + gx
    by = sig[..., 1] + gy
    bw = jnp.exp(pred[..., 2]) * scaled[:, 0][None, :, None, None]
    bh = jnp.exp(pred[..., 3]) * scaled[:, 1][None, :, None, None]
    boxes = jnp.stack([bx, by, bw, bh], axis=-1) * stride
    out = jnp.concatenate([boxes, sig[..., 4:5], sig[..., 5:]], axis=-1)
    return out.reshape(nB, nA * nG * nG, A)


if __name__ == "__main__":
    # small, deterministic example consistent with the module
    anchors = [(10.0, 13.0), (16.0, 30.0), (33.0, 23.0)]
    num_classes = 2
    img_dim = 64          # -> stride = img_dim / nG = 4
    nB, nG = 2, 16
    nA = len(anchors)
    C = nA * (5 + num_classes)   # 21

    key = jax.random.PRNGKey(0)
    x = jax.random.normal(key, (nB, C, nG, nG), dtype=jnp.float32)

    out = detection_layer_forward(x, anchors, num_classes, img_dim)
    out = jax.block_until_ready(out)

    ref = _reference(x, anchors, num_classes, img_dim)
    assert out.shape == (nB, nA * nG * nG, 5 + num_classes)
    assert out.dtype == jnp.float32
    max_err = float(jnp.max(jnp.abs(out - ref)))
    assert jnp.allclose(out, ref, rtol=2e-4, atol=2e-4), max_err
    print("KERNEL_OK")
</pallas_src>

<mosaic_0001>
module attributes {stable_mosaic.version = 11 : i64} {
  func.func @_detection_kernel(%arg0: i32, %arg1: i32, %arg2: memref<6x7x256xf32, #tpu.memory_space<vmem>>, %arg3: memref<1x7x256xf32, #tpu.memory_space<vmem>>, %arg4: memref<6x7x1xf32, #tpu.memory_space<vmem>>, %arg5: memref<6x7x256xf32, #tpu.memory_space<vmem>>) attributes {dimension_semantics = [#tpu.dimension_semantics<parallel>, #tpu.dimension_semantics<parallel>], iteration_bounds = array<i64: 1, 1>, scalar_prefetch = 0 : i64, scratch_operands = 0 : i64, tpu.core_type = #tpu.core_type<tc>, window_params = [{transform_indices = @transform_0, window_bounds = array<i64: 6, 7, 256>}, {transform_indices = @transform_1, window_bounds = array<i64: 1, 7, 256>}, {transform_indices = @transform_2, window_bounds = array<i64: 6, 7, 1>}, {transform_indices = @transform_3, window_bounds = array<i64: 6, 7, 256>}]} {
    %c0 = arith.constant 0 : index
    %c0_0 = arith.constant 0 : index
    %c0_1 = arith.constant 0 : index
    %0 = vector.load %arg2[%c0, %c0_0, %c0_1] : memref<6x7x256xf32, #tpu.memory_space<vmem>>, vector<6x7x256xf32>
    %1 = arith.negf %0 : vector<6x7x256xf32>
    %2 = math.exp %1 : vector<6x7x256xf32>
    %cst = arith.constant 1.000000e+00 : f32
    %3 = vector.broadcast %cst : f32 to vector<6x7x256xf32>
    %4 = arith.addf %3, %2 : vector<6x7x256xf32>
    %5 = arith.divf %3, %4 : vector<6x7x256xf32>
    %c0_2 = arith.constant 0 : index
    %c0_3 = arith.constant 0 : index
    %c0_4 = arith.constant 0 : index
    %6 = vector.load %arg3[%c0_2, %c0_3, %c0_4] : memref<1x7x256xf32, #tpu.memory_space<vmem>>, vector<1x7x256xf32>
    %7 = vector.broadcast %6 : vector<1x7x256xf32> to vector<6x7x256xf32>
    %8 = arith.addf %5, %7 : vector<6x7x256xf32>
    %c0_5 = arith.constant 0 : index
    %c0_6 = arith.constant 0 : index
    %c0_7 = arith.constant 0 : index
    %9 = vector.load %arg4[%c0_5, %c0_6, %c0_7] : memref<6x7x1xf32, #tpu.memory_space<vmem>>, vector<6x7x1xf32>
    %10 = vector.broadcast %9 : vector<6x7x1xf32> to vector<6x7x256xf32>
    %11 = arith.mulf %8, %10 : vector<6x7x256xf32>
    %c0_8 = arith.constant 0 : index
    %c0_9 = arith.constant 0 : index
    %c0_10 = arith.constant 0 : index
    %12 = vector.load %arg5[%c0_8, %c0_9, %c0_10] : memref<6x7x256xf32, #tpu.memory_space<vmem>>, vector<6x7x256xf32>
    tpu.vector_store %arg5[%c0_8, %c0_9, %c0_10], %11 {strides = array<i32>} : memref<6x7x256xf32, #tpu.memory_space<vmem>>, vector<6x7x256xf32>,
    %13 = vector.extract_strided_slice %0 {offsets = [0, 2, 0], sizes = [6, 2, 256], strides = [1, 1, 1]} : vector<6x7x256xf32> to vector<6x2x256xf32>
    %14 = math.exp %13 : vector<6x2x256xf32>
    %c0_11 = arith.constant 0 : index
    %c2 = arith.constant 2 : index
    %c0_12 = arith.constant 0 : index
    %15 = vector.load %arg4[%c0_11, %c2, %c0_12] : memref<6x7x1xf32, #tpu.memory_space<vmem>>, vector<6x2x1xf32>
    %16 = vector.broadcast %15 : vector<6x2x1xf32> to vector<6x2x256xf32>
    %17 = arith.mulf %14, %16 : vector<6x2x256xf32>
    %c0_13 = arith.constant 0 : index
    %c2_14 = arith.constant 2 : index
    %c0_15 = arith.constant 0 : index
    %18 = vector.load %arg5[%c0_13, %c2_14, %c0_15] : memref<6x7x256xf32, #tpu.memory_space<vmem>>, vector<6x2x256xf32>
    tpu.vector_store %arg5[%c0_13, %c2_14, %c0_15], %17 {strides = array<i32>} : memref<6x7x256xf32, #tpu.memory_space<vmem>>, vector<6x2x256xf32>,
    return
  }
  func.func @transform_0(%arg0: i32, %arg1: i32) -> (i32, i32, i32) {
    %c0_i32 = arith.constant 0 : i32
    %c0_i32_0 = arith.constant 0 : i32
    return %arg0, %c0_i32, %arg1 : i32, i32, i32
  }
  func.func @transform_1(%arg0: i32, %arg1: i32) -> (i32, i32, i32) {
    %c0_i32 = arith.constant 0 : i32
    %c0_i32_0 = arith.constant 0 : i32
    %c0_i32_1 = arith.constant 0 : i32
    return %c0_i32, %c0_i32_0, %arg1 : i32, i32, i32
  }
  func.func @transform_2(%arg0: i32, %arg1: i32) -> (i32, i32, i32) {
    %c0_i32 = arith.constant 0 : i32
    %c0_i32_0 = arith.constant 0 : i32
    %c0_i32_1 = arith.constant 0 : i32
    return %arg0, %c0_i32, %c0_i32_0 : i32, i32, i32
  }
  func.func @transform_3(%arg0: i32, %arg1: i32) -> (i32, i32, i32) {
    %c0_i32 = arith.constant 0 : i32
    %c0_i32_0 = arith.constant 0 : i32
    return %arg0, %c0_i32, %arg1 : i32, i32, i32
  }
}

</mosaic_0001>

<bundles_post_ra>
// kernel: tpu_custom_call.1
= control target key start
LH: loop header
LB: loop body
LE: loop exit
PB: predicated region body
PF: predicated region fallthrough
CT: control target
= control target key end

     0   :  { %8 = vsyncpa [#allocation3], 0  ;;  %s550_s0 = inlined_call_operand.hbm [shape: f32[6,7,256], index: 0, kind: input, shape index: {}]   ;;  %s551_s1 = inlined_call_operand.vmem [shape: f32[1,7,256], index: 1, kind: input, shape index: {}]   ;;  %s552_s2 = inlined_call_operand.vmem [shape: f32[6,7,1], index: 2, kind: input, shape index: {}]   ;;  %s553_s3 = inlined_call_operand.hbm [shape: f32[6,7,256], index: 3, kind: output, shape index: {}]  }
   0x1   :  { %9 = vsyncpa [#allocation4], 0  ;;  %s429_s12 = smov [#allocation2]  }
   0x2   :  { %s15_s13 = sshll.u32 %s429_s12, 4  ;;  %s16_s13 = int_to_ptr.vmem [resolvable:$true] %s15_s13 }
   0x3   :  { %s393_s14 = scalar_lea.vmem %s16_s13, 1536  ;;  %p398_p1 = scmp.lt.s32.totalorder %s16_s13, %s16_s13 }
   0x4   :  { %p394_p0 = scmp.ne.s32.totalorder %s16_s13, %s393_s14  ;;  %p399_p2 = scmp.lt.s32.totalorder %s393_s14, %s393_s14 }
   0x6   :  { %p400_p3 = por %p399_p2, %p398_p1 }
   0x8   :  { %p401_p4 = pnand %p400_p3, %p394_p0 }
   0xa   :  { %404 = shalt.err (!%p401_p4)
}
   0xb   :  { %s430_s15 = smov 256   ;;  %s431_s16 = smov 16  }
   0xc   :  { %21 = dma.hbm_to_vmem [thread:$0]  %s550_s0, 1536, %s16_s13, [#allocation3], %s430_s15, %s430_s15, %s431_s16  }
   0xd   :  { %425 = dma.done.wait [#allocation3], 1536  }
   0xe   :  { %426 = vsyncadd [#allocation3], 4294965760  ;;  %v432_v0 = vmov 0   ;;  %v213_v1 = vld [vmem:[%s552_s2 + $0x12] sm:$0x3] }
   0xf   :  { %312 = vset.pattern.permute.xlu1 %v432_v0  ;;  %311 = vset.pattern.permute.xlu0 %v432_v0  ;;  %v211_v2 = vld [vmem:[%s552_s2 + $0x2] sm:$0x3]  ;;  %v214_v3 = vld [vmem:[%s552_s2 + $0x1a] sm:$0x3]  ;;  %v212_v4 = vld [vmem:[%s552_s2 + $0xa] sm:$0x3] }
  0x10   :  { %227 = vperm.xlu1 %312, %v213_v1   ;;  %219 = vperm.xlu0 %311, %v211_v2   ;;  %v216_v5 = vld [vmem:[%s552_s2 + $0x2a] sm:$0x3]  ;;  %v215_v6 = vld [vmem:[%s552_s2 + $0x22] sm:$0x3]  ;;  %v130_v9 = vld [vmem:[%s552_s2 + $0x18] sm:$0x7f] }
  0x11   :  { %v128_v7 = vld [vmem:[%s552_s2 + $0x8] sm:$0x7f]  ;;  %v127_v8 = vld [vmem:[%s552_s2] sm:$0x7f]  ;;  %v129_v10 = vld [vmem:[%s552_s2 + $0x10] sm:$0x7f] }
  0x12   :  { %v132_v11 = vld [vmem:[%s552_s2 + $0x28] sm:$0x7f]  ;;  %v131_v12 = vld [vmem:[%s552_s2 + $0x20] sm:$0x7f]  ;;  %v496_v15 = vld [vmem:[#allocation2 + $0x30] sm:$0x7f] }
  0x13   :  { %v29_v13 = vld [vmem:[#allocation2] sm:$0x7f]  ;;  %v30_v14 = vld [vmem:[#allocation2 + $0x8] sm:$0x7f]  ;;  %v31_v17 = vld [vmem:[#allocation2 + $0x10] sm:$0x7f] }
  0x14   :  { %231 = vperm.xlu1 %312, %v214_v3   ;;  %223 = vperm.xlu0 %311, %v212_v4   ;;  %v294_v16 = vmul.f32 -1.442695, %v29_v13  ;;  %v295_v18 = vmul.f32 -1.442695, %v30_v14  ;;  %v32_v19 = vld [vmem:[#allocation2 + $0x18] sm:$0x7f] }
  0x15   :  { %v498_v20 = vld [vmem:[#allocation2 + $0x38] sm:$0x7f]  ;;  %v300_v21 = vmul.f32 -1.442695, %v496_v15  ;;  %v33_v22 = vld [vmem:[#allocation2 + $0x20] sm:$0x7f] }
  0x16   :  { %v296_v23 = vmul.f32 -1.442695, %v31_v17  ;;  %v34_v24 = vld [vmem:[#allocation2 + $0x28] sm:$0x7f]  ;;  %313 = vpow2.f32 %v294_v16  ;;  %v297_v25 = vmul.f32 -1.442695, %v32_v19 }
  0x17   :  { %315 = vpow2.f32 %v295_v18  ;;  %v301_v26 = vmul.f32 -1.442695, %v498_v20  ;;  %v502_v27 = vld [vmem:[#allocation2 + $0x50] sm:$0x7f]  ;;  %v298_v28 = vmul.f32 -1.442695, %v33_v22 }
  0x18   :  { %239 = vperm.xlu1 %312, %v216_v5   ;;  %235 = vperm.xlu0 %311, %v215_v6   ;;  %317 = vpow2.f32 %v300_v21  ;;  %v504_v29 = vld [vmem:[#allocation2 + $0x58] sm:$0x7f]  ;;  %v299_v30 = vmul.f32 -1.442695, %v34_v24  ;;  %v506_v31 = vld [vmem:[#allocation2 + $0x40] sm:$0x7f] }
  0x19   :  { %319 = vpow2.f32 %v296_v23  ;;  %v304_v32 = vmul.f32 -1.442695, %v502_v27  ;;  %v509_v33 = vld [vmem:[#allocation2 + $0x48] sm:$0x7f]  ;;  %v305_v34 = vmul.f32 -1.442695, %v504_v29 }
  0x1a   :  { %321 = vpow2.f32 %v297_v25  ;;  %v302_v35 = vmul.f32 -1.442695, %v506_v31  ;;  %v303_v36 = vmul.f32 -1.442695, %v509_v33  ;;  %v195_v37 = vmul.f32 1.442695, %v33_v22 }
  0x1b   :  { %323 = vpow2.f32 %v301_v26  ;;  %v197_v38 = vmul.f32 1.442695, %v34_v24  ;;  %v187_v39 = vmul.f32 1.442695, %v29_v13  ;;  %v189_v41 = vmul.f32 1.442695, %v30_v14 }
  0x1c   :  { %140 = vperm.xlu1 %312, %v128_v7   ;;  %135 = vperm.xlu0 %311, %v127_v8   ;;  %325 = vpow2.f32 %v298_v28  ;;  %v191_v43 = vmul.f32 1.442695, %v31_v17  ;;  %v193_v45 = vmul.f32 1.442695, %v32_v19  ;;  %v199_v5 = vmul.f32 1.442695, %v496_v15 }
  0x1d   :  { %327 = vpow2.f32 %v299_v30  ;;  %v201_v7 = vmul.f32 1.442695, %v498_v20  ;;  %v209_v13 = vmul.f32 1.442695, %v504_v29  ;;  %v203_v15 = vmul.f32 1.442695, %v506_v31 }
  0x1e   :  { %329 = vpow2.f32 %v304_v32  ;;  %v205_v17 = vmul.f32 1.442695, %v509_v33  ;;  %v113_v24 = vld [vmem:[%s551_s1] sm:$0x7f]  ;;  %v114_v25 = vld [vmem:[%s551_s1 + $0x8] sm:$0x7f] }
  0x1f   :  { %331 = vpow2.f32 %v305_v34  ;;  %s433_s1 = smov [#allocation5]  }
  0x20   :  { %150 = vperm.xlu1 %312, %v130_v9   ;;  %145 = vperm.xlu0 %311, %v129_v10   ;;  %333 = vpow2.f32 %v302_v35  ;;  %v207_v9 = vmul.f32 1.442695, %v502_v27  ;;  %s282_s20 = sshll.u32 %s433_s1, 4  ;;  %s283_s20 = int_to_ptr.vmem [resolvable:$true] %s282_s20 }
  0x21   :  { %335 = vpow2.f32 %v303_v36  ;;  %s405_s21 = scalar_lea.vmem %s283_s20, 1536  ;;  %p410_p6 = scmp.lt.s32.totalorder %s283_s20, %s283_s20 }
  0x22   :  { %337 = vpow2.f32 %v195_v37  ;;  %p406_p5 = scmp.ne.s32.totalorder %s283_s20, %s405_s21  ;;  %p411_p7 = scmp.lt.s32.totalorder %s405_s21, %s405_s21 }
  0x23   :  { %v314_v40 = vpop.eup %313  ;;  %339 = vpow2.f32 %v197_v38 }
  0x24   :  { %160 = vperm.xlu1 %312, %v132_v11   ;;  %155 = vperm.xlu0 %311, %v131_v12   ;;  %v316_v42 = vpop.eup %315  ;;  %341 = vpow2.f32 %v187_v39  ;;  %v77_v47 = vadd.f32 1.0, %v314_v40  ;;  %p412_p8 = por %p411_p7, %p410_p6 }
  0x25   :  { %v318_v44 = vpop.eup %317  ;;  %343 = vpow2.f32 %v189_v41  ;;  %v78_v49 = vadd.f32 1.0, %v316_v42 }
  0x26   :  { %v320_v46 = vpop.eup %319  ;;  %345 = vpow2.f32 %v191_v43  ;;  %v83_v51 = vadd.f32 1.0, %v318_v44  ;;  %p413_p9 = pnand %p412_p8, %p406_p5 }
  0x27   :  { %v322_v48 = vpop.eup %321  ;;  %347 = vpow2.f32 %v193_v45  ;;  %v79_v53 = vadd.f32 1.0, %v320_v46 }
  0x28   :  { %v324_v50 = vpop.eup %323  ;;  %v80_v55 = vadd.f32 1.0, %v322_v48  ;;  %349 = vrcp.f32 %v77_v47 }
  0x29   :  { %v326_v52 = vpop.eup %325  ;;  %351 = vrcp.f32 %v78_v49  ;;  %v84_v57 = vadd.f32 1.0, %v324_v50 }
  0x2a   :  { %v328_v54 = vpop.eup %327  ;;  %353 = vrcp.f32 %v83_v51  ;;  %v81_v59 = vadd.f32 1.0, %v326_v52 }
  0x2b   :  { %v330_v56 = vpop.eup %329  ;;  %355 = vrcp.f32 %v79_v53  ;;  %v82_v61 = vadd.f32 1.0, %v328_v54 }
  0x2c   :  { %v332_v58 = vpop.eup %331  ;;  %357 = vrcp.f32 %v80_v55  ;;  %v87_v63 = vadd.f32 1.0, %v330_v56 }
  0x2d   :  { %v334_v60 = vpop.eup %333  ;;  %359 = vrcp.f32 %v84_v57  ;;  %v88_v0 = vadd.f32 1.0, %v332_v58 }
  0x2e   :  { %v336_v62 = vpop.eup %335  ;;  %361 = vrcp.f32 %v81_v59  ;;  %v85_v1 = vadd.f32 1.0, %v334_v60 }
  0x2f   :  { %v514_v2 = vpop.eup %337  ;;  %363 = vrcp.f32 %v82_v61  ;;  %v86_v3 = vadd.f32 1.0, %v336_v62 }
  0x30   :  { %v516_v4 = vpop.eup %339  ;;  %365 = vrcp.f32 %v87_v63 }
  0x31   :  { %v342_v6 = vpop.eup %341  ;;  %367 = vrcp.f32 %v88_v0 }
  0x32   :  { %v344_v8 = vpop.eup %343  ;;  %369 = vrcp.f32 %v85_v1 }
  0x33   :  { %v346_v10 = vpop.eup %345  ;;  %371 = vrcp.f32 %v86_v3 }
  0x34   :  { %v348_v14 = vpop.eup %347  ;;  %373 = vpow2.f32 %v199_v5 }
  0x35   :  { %v350_v16 = vpop.eup %349  ;;  %375 = vpow2.f32 %v201_v7 }
  0x36   :  { %v352_v18 = vpop.eup %351  ;;  %377 = vpow2.f32 %v207_v9  ;;  %v115_v34 = vadd.f32 %v350_v16, %v113_v24 }
  0x37   :  { %v354_v19 = vpop.eup %353  ;;  %379 = vpow2.f32 %v209_v13  ;;  %v116_v35 = vadd.f32 %v352_v18, %v114_v25 }
  0x38   :  { %v356_v22 = vpop.eup %355  ;;  %381 = vpow2.f32 %v203_v15  ;;  %v121_v39 = vadd.f32 %v354_v19, %v113_v24 }
  0x39   :  { %v358_v23 = vpop.eup %357  ;;  %383 = vpow2.f32 %v205_v17  ;;  %v117_v32 = vadd.f32 %v356_v22, %v113_v24 }
  0x3a   :  { %v360_v26 = vpop.eup %359  ;;  %v118_v33 = vadd.f32 %v358_v23, %v114_v25 }
  0x3b   :  { %v362_v27 = vpop.eup %361  ;;  %v122_v40 = vadd.f32 %v360_v26, %v114_v25 }
  0x3c   :  { %v364_v31 = vpop.eup %363  ;;  %v119_v46 = vadd.f32 %v362_v27, %v113_v24 }
  0x3d   :  { %v366_v36 = vpop.eup %365  ;;  %v120_v47 = vadd.f32 %v364_v31, %v114_v25 }
  0x3e   :  { %v368_v38 = vpop.eup %367  ;;  %v125_v59 = vadd.f32 %v366_v36, %v113_v24 }
  0x3f   :  { %v370_v41 = vpop.eup %369  ;;  %v126_v60 = vadd.f32 %v368_v38, %v114_v25 }
  0x40   :  { %v372_v48 = vpop.eup %371  ;;  %v123_v3 = vadd.f32 %v370_v41, %v113_v24 }
  0x41   :  { %v374_v53 = vpop.eup %373  ;;  %v124_v5 = vadd.f32 %v372_v48, %v114_v25 }
  0x42   :  { %v376_v58 = vpop.eup %375 }
  0x43   :  { %v378_v61 = vpop.eup %377 }
  0x8b   :  { %v521_v11 = vpop.permute.xlu1 %227  ;;  %v220_v12 = vpop.permute.xlu0 %219 }
  0x8c   :  { %v241_v28 = vrot.slane %v220_v12, 6  ;;  %v243_v42 = vrot.slane %v521_v11, 6 }
  0x8e   :  { %v253_v43 = vmul.f32 %v342_v6, %v241_v28  ;;  %v254_v54 = vmul.f32 %v344_v8, %v241_v28  ;;  %v257_v62 = vmul.f32 %v514_v2, %v243_v42  ;;  %v258_v63 = vmul.f32 %v516_v4, %v243_v42  ;;  %v380_v6 = vpop.eup %379 }
  0x8f   :  { %v526_v20 = vpop.permute.xlu1 %231  ;;  %v224_v21 = vpop.permute.xlu0 %223 }
  0x90   :  { %v242_v37 = vrot.slane %v224_v21, 6  ;;  %v244_v55 = vrot.slane %v526_v20, 6  ;;  %v382_v11 = vpop.eup %381 }
  0x92   :  { %v255_v56 = vmul.f32 %v346_v10, %v242_v37  ;;  %v256_v57 = vmul.f32 %v348_v14, %v242_v37  ;;  %v259_v12 = vmul.f32 %v374_v53, %v244_v55  ;;  %v260_v13 = vmul.f32 %v376_v58, %v244_v55  ;;  %v384_v14 = vpop.eup %383 }
  0x93   :  { %v534_v29 = vpop.permute.xlu1 %239  ;;  %v536_v30 = vpop.permute.xlu0 %235 }
  0x94   :  { %v246_v2 = vrot.slane %v534_v29, 6  ;;  %v245_v4 = vrot.slane %v536_v30, 6 }
  0x96   :  { %v263_v21 = vmul.f32 %v378_v61, %v246_v2  ;;  %v264_v22 = vmul.f32 %v380_v6, %v246_v2  ;;  %v261_v23 = vmul.f32 %v382_v11, %v245_v4  ;;  %v262_v24 = vmul.f32 %v384_v14, %v245_v4 }
  0x97   :  { %v141_v44 = vpop.permute.xlu1 %140  ;;  %v136_v45 = vpop.permute.xlu0 %135 }
  0x98   :  { %v165_v49 = vmul.f32 %v141_v44, %v117_v32  ;;  %v166_v50 = vmul.f32 %v141_v44, %v118_v33  ;;  %v163_v51 = vmul.f32 %v136_v45, %v115_v34  ;;  %v164_v52 = vmul.f32 %v136_v45, %v116_v35 }
  0x9a   :  { %177 = vst [vmem:[#allocation5 + $0x10] sm:$0x7f] %v165_v49  ;;  %178 = vst [vmem:[#allocation5 + $0x18] sm:$0x7f] %v166_v50 }
  0x9b   :  { %175 = vst [vmem:[#allocation5] sm:$0x7f] %v163_v51  ;;  %176 = vst [vmem:[#allocation5 + $0x8] sm:$0x7f] %v164_v52  ;;  %v151_v0 = vpop.permute.xlu1 %150  ;;  %v146_v1 = vpop.permute.xlu0 %145 }
  0x9c   :  { %267 = vst [vmem:[#allocation5 + $0x10] sm:$0xc] %v255_v56  ;;  %268 = vst [vmem:[#allocation5 + $0x18] sm:$0xc] %v256_v57  ;;  %v169_v7 = vmul.f32 %v151_v0, %v121_v39  ;;  %v170_v8 = vmul.f32 %v151_v0, %v122_v40  ;;  %v167_v9 = vmul.f32 %v146_v1, %v119_v46 }
  0x9d   :  { %265 = vst [vmem:[#allocation5] sm:$0xc] %v253_v43  ;;  %266 = vst [vmem:[#allocation5 + $0x8] sm:$0xc] %v254_v54  ;;  %v168_v10 = vmul.f32 %v146_v1, %v120_v47 }
  0x9e   :  { %181 = vst [vmem:[#allocation5 + $0x30] sm:$0x7f] %v169_v7  ;;  %182 = vst [vmem:[#allocation5 + $0x38] sm:$0x7f] %v170_v8 }
  0x9f   :  { %179 = vst [vmem:[#allocation5 + $0x20] sm:$0x7f] %v167_v9  ;;  %180 = vst [vmem:[#allocation5 + $0x28] sm:$0x7f] %v168_v10  ;;  %v161_v15 = vpop.permute.xlu1 %160  ;;  %v156_v16 = vpop.permute.xlu0 %155 }
  0xa0   :  { %271 = vst [vmem:[#allocation5 + $0x30] sm:$0xc] %v259_v12  ;;  %272 = vst [vmem:[#allocation5 + $0x38] sm:$0xc] %v260_v13  ;;  %v173_v17 = vmul.f32 %v161_v15, %v125_v59  ;;  %v174_v18 = vmul.f32 %v161_v15, %v126_v60  ;;  %v171_v19 = vmul.f32 %v156_v16, %v123_v3 }
  0xa1   :  { %269 = vst [vmem:[#allocation5 + $0x20] sm:$0xc] %v257_v62  ;;  %270 = vst [vmem:[#allocation5 + $0x28] sm:$0xc] %v258_v63  ;;  %v172_v20 = vmul.f32 %v156_v16, %v124_v5 }
  0xa2   :  { %185 = vst [vmem:[#allocation5 + $0x50] sm:$0x7f] %v173_v17  ;;  %186 = vst [vmem:[#allocation5 + $0x58] sm:$0x7f] %v174_v18 }
  0xa3   :  { %183 = vst [vmem:[#allocation5 + $0x40] sm:$0x7f] %v171_v19  ;;  %184 = vst [vmem:[#allocation5 + $0x48] sm:$0x7f] %v172_v20 }
  0xa4   :  { %275 = vst [vmem:[#allocation5 + $0x50] sm:$0xc] %v263_v21  ;;  %276 = vst [vmem:[#allocation5 + $0x58] sm:$0xc] %v264_v22 }
  0xa5   :  { %273 = vst [vmem:[#allocation5 + $0x40] sm:$0xc] %v261_v23  ;;  %274 = vst [vmem:[#allocation5 + $0x48] sm:$0xc] %v262_v24 }
  0xa6   :  { %416 = shalt.err (!%p413_p9)
}
  0xa7   :  { %288 = dma.vmem_to_hbm [thread:$0]  %s283_s20, 1536, %s553_s3, [#allocation4], %s430_s15, %s430_s15, %s431_s16  }
  0xa8   :  { %427 = dma.done.wait [#allocation4], 1536  }
  0xa9   :  { %428 = vsyncadd [#allocation4], 4294965760 }
  0xaa   :  { %292 = vsyncpa [#allocation3], 1 }
  0xab   :  { %293 = vsyncpa [#allocation4], 1 }

</bundles_post_ra>
